<compile_context>
chip_gen: v5e
topology: v5e:2x2
jax: 0.10.0
libtpu: 0.0.40
codegen_flags: <defaults>
</compile_context>

<pallas_src>
import math

import jax
import jax.numpy as jnp
from jax.experimental import pallas as pl
from jax.experimental.pallas import tpu as pltpu


def _round_up(x, m):
    return ((x + m - 1) // m) * m


# ---------------------------------------------------------------------------
# Kernels
# ---------------------------------------------------------------------------
def _mlp_kernel_single_k(x_ref, w_ref, b_ref, o_ref):
    """K grid axis collapsed (tk == K): one MXU pass per output tile, bias fused."""
    acc = jnp.dot(x_ref[...], w_ref[...], preferred_element_type=jnp.float32)
    acc = acc + b_ref[...]              # (1, tn) broadcasts over (tm, tn)
    o_ref[...] = acc.astype(o_ref.dtype)


def _mlp_kernel_f32(x_ref, w_ref, b_ref, o_ref):
    """Blocked K, f32 output: accumulate directly into the resident output block.

    NOTE: relies on K being the innermost ("arbitrary") grid axis so the (i, j)
    output block stays VMEM-resident across all K steps. Do not reorder the grid.
    """
    k = pl.program_id(2)

    @pl.when(k == 0)
    def _():
        # Fold bias into the accumulator init; epilogue disappears entirely.
        o_ref[...] = jnp.broadcast_to(b_ref[...], o_ref.shape)

    o_ref[...] += jnp.dot(x_ref[...], w_ref[...],
                          preferred_element_type=jnp.float32)


def _mlp_kernel_acc(x_ref, w_ref, b_ref, o_ref, acc_ref):
    """Blocked K, low-precision output: f32 scratch accumulator, cast on last step."""
    k = pl.program_id(2)

    @pl.when(k == 0)
    def _():
        acc_ref[...] = jnp.broadcast_to(b_ref[...], acc_ref.shape)

    acc_ref[...] += jnp.dot(x_ref[...], w_ref[...],
                            preferred_element_type=jnp.float32)

    @pl.when(k == pl.num_programs(2) - 1)
    def _():
        o_ref[...] = acc_ref[...].astype(o_ref.dtype)


# ---------------------------------------------------------------------------
# Tiling / VMEM heuristics
# ---------------------------------------------------------------------------
def _vmem_capacity_bytes():
    try:
        return int(pltpu.get_tpu_info().vmem_capacity_bytes)
    except Exception:
        return 64 << 20   # conservative fallback (v7x per-core VMEM)


def _tile_candidates(cap, align, max_tile=1024):
    """Descending tile sizes <= cap, multiples of `align` (or == cap)."""
    vals, v = [], max_tile
    while v >= align:
        vals.append(min(v, cap))
        v //= 2
    vals.append(min(align, cap))
    out = []
    for v in vals:
        if v not in out:
            out.append(v)
    return out


def _select_tiles(M, K, N, in_bytes, out_bytes, m_align, budget, need_acc):
    """Pick (tm, tk, tn): biggest output-facing tile that fits, then biggest tk."""
    tm_cap = _round_up(max(M, 1), m_align)
    tn_cap = _round_up(max(N, 1), 128)

    def fits(tm, tk, tn):
        b = 2 * (tm * tk + tk * tn) * in_bytes      # double-buffered x, W tiles
        b += 2 * tm * tn * out_bytes                # double-buffered output tile
        b += 2 * tn * 4                             # bias tile (f32)
        if need_acc:
            b += tm * tn * 4                        # f32 accumulator scratch
        return b <= budget

    tm_list = _tile_candidates(tm_cap, m_align)
    tn_list = _tile_candidates(tn_cap, 128)
    pairs = sorted(((a, b) for a in tm_list for b in tn_list),
                   key=lambda p: (-(p[0] * p[1]), abs(p[0] - p[1])))

    # Step 1: maximize (tm, tn) — these set HBM re-read traffic for x and W.
    tk_probe = min(K, 512)
    tm, tn = pairs[-1]
    for cand_m, cand_n in pairs:
        if fits(cand_m, tk_probe, cand_n):
            tm, tn = cand_m, cand_n
            break

    # Step 2: with (tm, tn) fixed, make tk as large as possible; collapse the K
    # grid axis entirely if the full strip fits.
    if fits(tm, K, tn):
        tk = K
    else:
        tk = 128
        for cand_k in (4096, 2048, 1024, 512, 256, 128):
            if cand_k < K and fits(tm, cand_k, tn):
                tk = cand_k
                break

    # Single-block axes: use the exact dim (block == full array dim is always a
    # legal block shape, avoids block overhang and any wrapper pad/slice pass).
    tm = min(tm, M)
    tn = min(tn, N)

    # Megacore: make sure the parallel grid has >= 2 blocks on problems big enough
    # to care, so both v7x TensorCores get work.
    if ((M + tm - 1) // tm) * ((N + tn - 1) // tn) == 1 and M * N >= 256 * 512:
        if tn >= tm and tn >= 256:
            tn = _round_up((tn + 1) // 2, 128)
        elif tm >= 2 * m_align:
            tm = _round_up((tm + 1) // 2, m_align)
        elif tn >= 256:
            tn = _round_up((tn + 1) // 2, 128)

    return tm, tk, tn


# ---------------------------------------------------------------------------
# Forward wrapper
# ---------------------------------------------------------------------------
def mlp_layer_forward(x, weight, bias=None, *, tm=None, tk=None, tn=None,
                      compute_dtype=None, out_dtype=None):
    """Pallas equivalent of MLPLayer.forward: x @ weight (+ bias).

    compute_dtype: optional low-precision MXU input dtype (e.g. jnp.bfloat16,
    useful on all generations incl. v5e). Accumulation stays f32. For best perf,
    pass x/weight already stored in compute_dtype (the cast here is an extra,
    un-hidden HBM pass).
    """
    M, K = x.shape
    Kw, N = weight.shape
    assert K == Kw, "inner dims must match"
    out_dtype = out_dtype or x.dtype          # captured before any cast

    if compute_dtype is not None:
        if x.dtype != compute_dtype:
            x = x.astype(compute_dtype)
        if weight.dtype != compute_dtype:
            weight = weight.astype(compute_dtype)

    if bias is None:
        bias2d = jnp.zeros((1, N), dtype=jnp.float32)
    else:
        bias2d = bias.astype(jnp.float32).reshape(1, N)

    in_bytes = jnp.dtype(x.dtype).itemsize
    out_bytes = jnp.dtype(out_dtype).itemsize
    # Sub-32-bit dtypes pack rows along sublanes: 16 rows/bf16 block, 32 rows/int8.
    m_align = 8 * max(1, 4 // in_bytes)
    need_acc = (out_dtype != jnp.float32)

    # Generation-aware VMEM limit with headroom for compiler scratch/semaphores:
    # ~109 MiB on 128 MiB chips (v5e/v6e), ~54 MiB on 64 MiB chips (v7x).
    cap = _vmem_capacity_bytes()
    vmem_limit = min(int(cap * 0.85), cap - (8 << 20))

    if tm is None or tk is None or tn is None:
        a_tm, a_tk, a_tn = _select_tiles(
            M, K, N, in_bytes, out_bytes, m_align,
            budget=max(vmem_limit - (6 << 20), 8 << 20), need_acc=need_acc)
        tm = a_tm if tm is None else tm
        tk = a_tk if tk is None else tk
        tn = a_tn if tn is None else tn

    collapsed = tk >= K
    if collapsed:
        tk = K                                # full-dim K block, no padding needed

    assert tm == M or tm % 8 == 0, "tm must be a multiple of 8 or equal M"
    assert tn == N or tn % 128 == 0, "tn must be a multiple of 128 or equal N"
    assert collapsed or tk % 128 == 0, "blocked tk must be a multiple of 128"

    grid_m = pl.cdiv(M, tm)
    grid_n = pl.cdiv(N, tn)

    cost = pl.CostEstimate(
        flops=2 * M * K * N,
        bytes_accessed=(M * K + K * N) * in_bytes + M * N * out_bytes + N * 4,
        transcendentals=0,
    )

    if collapsed:
        grid = (grid_m, grid_n)
        in_specs = [
            pl.BlockSpec((tm, K), lambda i, j: (i, 0)),    # x strip
            pl.BlockSpec((K, tn), lambda i, j: (0, j)),    # W strip
            pl.BlockSpec((1, tn), lambda i, j: (0, j)),    # bias tile
        ]
        out_spec = pl.BlockSpec((tm, tn), lambda i, j: (i, j))
        kernel = _mlp_kernel_single_k
        scratch = []
        dim_sem = ("parallel", "parallel")
    else:
        Kp = _round_up(K, tk)
        if Kp != K:
            # Zero K-padding contributes nothing to the accumulation.
            x = jnp.pad(x, ((0, 0), (0, Kp - K)))
            weight = jnp.pad(weight, ((0, Kp - K), (0, 0)))
        # K innermost ("arbitrary"): output block stays VMEM-resident across K.
        grid = (grid_m, grid_n, Kp // tk)
        in_specs = [
            pl.BlockSpec((tm, tk), lambda i, j, k: (i, k)),    # x tile
            pl.BlockSpec((tk, tn), lambda i, j, k: (k, j)),    # W tile
            pl.BlockSpec((1, tn), lambda i, j, k: (0, j)),     # bias tile
        ]
        out_spec = pl.BlockSpec((tm, tn), lambda i, j, k: (i, j))
        if need_acc:
            kernel = _mlp_kernel_acc
            scratch = [pltpu.VMEM((tm, tn), jnp.float32)]
        else:
            kernel = _mlp_kernel_f32
            scratch = []
        dim_sem = ("parallel", "parallel", "arbitrary")

    out = pl.pallas_call(
        kernel,
        out_shape=jax.ShapeDtypeStruct((M, N), out_dtype),
        grid_spec=pltpu.PrefetchScalarGridSpec(
            num_scalar_prefetch=0,
            grid=grid,
            in_specs=in_specs,
            out_specs=out_spec,
            scratch_shapes=scratch,
        ),
        compiler_params=pltpu.CompilerParams(
            dimension_semantics=dim_sem,
            vmem_limit_bytes=vmem_limit,
        ),
        cost_estimate=cost,
    )(x, weight, bias2d)
    return out


def init_mlp_params(key, in_features, out_features, dtype=jnp.float32):
    """Matches MLPLayer.reset_parameters: weight, bias ~ Normal(mean=-stdv, std=stdv),
    stdv = 1/sqrt(out_features) (torch's .normal_(-stdv, stdv) uses mean=-stdv)."""
    stdv = 1.0 / math.sqrt(out_features)
    kw, kb = jax.random.split(key)
    weight = (-stdv + stdv * jax.random.normal(kw, (in_features, out_features))).astype(dtype)
    bias = (-stdv + stdv * jax.random.normal(kb, (out_features,))).astype(dtype)
    return weight, bias


if __name__ == "__main__":
    key = jax.random.PRNGKey(0)
    k_x, k_p, k_x2, k_p2, k_x3, k_p3 = jax.random.split(key, 6)

    # 1) Small shapes matching torch.mm(x, weight): (batch, in) @ (in, out) + bias.
    batch, in_features, out_features = 8, 32, 16
    x = jax.random.normal(k_x, (batch, in_features), dtype=jnp.float32)
    weight, bias = init_mlp_params(k_p, in_features, out_features)
    out = jax.block_until_ready(mlp_layer_forward(x, weight, bias))
    ref = x @ weight + bias
    assert out.shape == (batch, out_features)
    assert jnp.allclose(out, ref, atol=1e-5, rtol=1e-5), "mismatch vs reference"

    # 2) Unaligned shapes, bias=None: collapsed-K, full-dim blocks, no padding.
    x2 = jax.random.normal(k_x2, (10, 200), dtype=jnp.float32)
    w2, _ = init_mlp_params(k_p2, 200, 48)
    out2 = jax.block_until_ready(mlp_layer_forward(x2, w2, None))
    assert out2.shape == (10, 48)
    assert jnp.allclose(out2, x2 @ w2, atol=1e-4, rtol=1e-4), "mismatch (no-bias path)"

    # 3) Force the blocked-K / multi-block path with explicit small tiles
    #    (partial M/N edge blocks, zero K-padding to a multiple of tk).
    x3 = jax.random.normal(k_x3, (136, 200), dtype=jnp.float32)
    w3, b3 = init_mlp_params(k_p3, 200, 176)
    ref3 = x3 @ w3 + b3
    out3 = jax.block_until_ready(
        mlp_layer_forward(x3, w3, b3, tm=64, tk=128, tn=128))
    assert out3.shape == (136, 176)
    assert jnp.allclose(out3, ref3, atol=1e-4, rtol=1e-4), "mismatch (blocked-K path)"

    # 4) bf16 compute (f32 accumulation + f32 output): looser tolerance by design.
    out4 = jax.block_until_ready(
        mlp_layer_forward(x, weight, bias, compute_dtype=jnp.bfloat16))
    assert out4.shape == (batch, out_features)
    assert jnp.allclose(out4, ref, atol=5e-2, rtol=5e-2), "mismatch (bf16 compute)"

    # 5) bf16 in/out with blocked K: exercises the f32 scratch-accumulator kernel.
    out5 = jax.block_until_ready(
        mlp_layer_forward(x3.astype(jnp.bfloat16), w3.astype(jnp.bfloat16), b3,
                          tm=64, tk=128, tn=128))
    assert out5.shape == (136, 176) and out5.dtype == jnp.bfloat16
    assert jnp.allclose(out5.astype(jnp.float32), ref3, atol=1e-1, rtol=5e-2), \
        "mismatch (bf16 blocked-K path)"

    print("KERNEL_OK")
</pallas_src>

<mosaic_0001>
module attributes {stable_mosaic.version = 11 : i64} {
  func.func @_mlp_kernel_single_k(%arg0: i32, %arg1: i32, %arg2: memref<8x32xf32, #tpu.memory_space<vmem>>, %arg3: memref<32x16xf32, #tpu.memory_space<vmem>>, %arg4: memref<1x16xf32, #tpu.memory_space<vmem>>, %arg5: memref<8x16xf32, #tpu.memory_space<vmem>>) attributes {dimension_semantics = [#tpu.dimension_semantics<parallel>, #tpu.dimension_semantics<parallel>], iteration_bounds = array<i64: 1, 1>, scalar_prefetch = 0 : i64, scratch_operands = 0 : i64, tpu.core_type = #tpu.core_type<tc>, window_params = [{transform_indices = @transform_0, window_bounds = array<i64: 8, 32>}, {transform_indices = @transform_1, window_bounds = array<i64: 32, 16>}, {transform_indices = @transform_2, window_bounds = array<i64: 1, 16>}, {transform_indices = @transform_3, window_bounds = array<i64: 8, 16>}]} {
    %c0 = arith.constant 0 : index
    %c0_0 = arith.constant 0 : index
    %0 = vector.load %arg2[%c0, %c0_0] : memref<8x32xf32, #tpu.memory_space<vmem>>, vector<8x32xf32>
    %c0_1 = arith.constant 0 : index
    %c0_2 = arith.constant 0 : index
    %1 = vector.load %arg3[%c0_1, %c0_2] : memref<32x16xf32, #tpu.memory_space<vmem>>, vector<32x16xf32>
    %cst = arith.constant dense<0.000000e+00> : vector<8x16xf32>
    %2 = tpu.matmul %0, %1, %cst {dimension_numbers = #tpu.dot_dimension_numbers<[1], [0], [0], [1], [0, 0, 1, 1], [], []>} : vector<8x32xf32>, vector<32x16xf32>, vector<8x16xf32> -> vector<8x16xf32>
    %c0_3 = arith.constant 0 : index
    %c0_4 = arith.constant 0 : index
    %3 = vector.load %arg4[%c0_3, %c0_4] : memref<1x16xf32, #tpu.memory_space<vmem>>, vector<1x16xf32>
    %4 = vector.broadcast %3 : vector<1x16xf32> to vector<8x16xf32>
    %5 = arith.addf %2, %4 : vector<8x16xf32>
    %c0_5 = arith.constant 0 : index
    %c0_6 = arith.constant 0 : index
    %6 = vector.load %arg5[%c0_5, %c0_6] : memref<8x16xf32, #tpu.memory_space<vmem>>, vector<8x16xf32>
    tpu.vector_store %arg5[%c0_5, %c0_6], %5 {strides = array<i32>} : memref<8x16xf32, #tpu.memory_space<vmem>>, vector<8x16xf32>,
    return
  }
  func.func @transform_0(%arg0: i32, %arg1: i32) -> (i32, i32) {
    %c0_i32 = arith.constant 0 : i32
    %c0_i32_0 = arith.constant 0 : i32
    return %arg0, %c0_i32 : i32, i32
  }
  func.func @transform_1(%arg0: i32, %arg1: i32) -> (i32, i32) {
    %c0_i32 = arith.constant 0 : i32
    %c0_i32_0 = arith.constant 0 : i32
    return %c0_i32, %arg1 : i32, i32
  }
  func.func @transform_2(%arg0: i32, %arg1: i32) -> (i32, i32) {
    %c0_i32 = arith.constant 0 : i32
    %c0_i32_0 = arith.constant 0 : i32
    return %c0_i32, %arg1 : i32, i32
  }
  func.func @transform_3(%arg0: i32, %arg1: i32) -> (i32, i32) {
    %c0_i32 = arith.constant 0 : i32
    return %arg0, %arg1 : i32, i32
  }
}

</mosaic_0001>

<bundles_post_ra>
// kernel: tpu_custom_call.1
= control target key start
LH: loop header
LB: loop body
LE: loop exit
PB: predicated region body
PF: predicated region fallthrough
CT: control target
= control target key end

     0   :  { %s137_s0 = inlined_call_operand.vmem [shape: f32[8,32], index: 0, kind: input, shape index: {}]   ;;  %s138_s1 = inlined_call_operand.vmem [shape: f32[32,16], index: 1, kind: input, shape index: {}]   ;;  %s139_s2 = inlined_call_operand.vmem [shape: f32[1,16], index: 2, kind: input, shape index: {}]   ;;  %s140_s3 = inlined_call_operand.hbm [shape: f32[8,16], index: 3, kind: output, shape index: {}]  }
   0x1   :  { %v19_v0 = vld [vmem:[%s138_s1 + $0x18] sm:$0xff]  ;;  %v18_v1 = vld [vmem:[%s138_s1 + $0x10] sm:$0xff]  ;;  %v17_v2 = vld [vmem:[%s138_s1 + $0x8] sm:$0xff] }
   0x2   :  { %40 = vmatpush.msra.mxu0 %v19_v0 }
   0x3   :  { %8 = vsyncpa [#allocation3], 0  ;;  %v16_v3 = vld [vmem:[%s138_s1] sm:$0xff]  ;;  %vm24_vm0 = vcmask 261120   ;;  %s95_s24 = smov [#allocation2]   ;;  %s57_s28 = sshll.u32 %s140_s3, 4  ;;  %s58_s28 = int_to_ptr.hbm [resolvable:$true] %s57_s28 }
   0x4   :  { %41 = vmatpush.msra.mxu0 %v18_v1  ;;  %v15_v4 = vld [vmem:[%s137_s0] sm:$0xff]  ;;  %s55_s25 = sshll.u32 %s95_s24, 4  ;;  %vm48_vm1 = vcmask 130048   ;;  %s56_s25 = int_to_ptr.vmem [resolvable:$true] %s55_s25 }
   0x5   :  { %v68_v5 = vld [vmem:[%s139_s2] ss:$0 sm:$0xff] }
   0x6   :  { %42 = vmatpush.msra.mxu0 %v17_v2 }
   0x8   :  { %43 = vmatpush.msra.mxu0 %v16_v3 }
   0x9   :  { %66 = vmatmul.msk.f32.vlgmr.msra.gmra.mxu0 %vm24_vm0, %v15_v4 }
  0x86   :  { %v45_v6 = vpop.f32.mrf.mxu0 }
  0x87   :  { %v46_v7 = vadd.f32 %v68_v5, %v45_v6 }
  0x89   :  { %49 = vst.msk [vmem:[#allocation2] sm:$0xff] %vm48_vm1, %v46_v7 }
  0x8a   :  { %60 = dma.vmem_to_hbm [thread:$0]  %s56_s25, 128, %s58_s28, [#allocation3]  }
  0x8b   :  { %93 = dma.done.wait [#allocation3], 128  }
  0x8c   :  { %94 = vsyncadd [#allocation3], 4294967168 }
  0x8d   :  { %65 = vsyncpa [#allocation3], 1 }

</bundles_post_ra>
